<compile_context>
chip_gen: v5e
topology: v5e:2x2
jax: 0.10.0
libtpu: 0.0.40
codegen_flags: <defaults>
</compile_context>

<pallas_src>
import jax
import jax.numpy as jnp
from jax.experimental import pallas as pl
from jax.experimental.pallas import tpu as pltpu


def _conv_bn_relu_kernel(x_ref, w_ref, s_ref, o_ref):
    # x_ref: (Cin, t)   w_ref: (Cout, Cin)   s_ref: (Cout, 1)   o_ref: (Cout, t)
    h = jnp.dot(w_ref[...], x_ref[...], preferred_element_type=jnp.float32)
    o_ref[...] = jnp.maximum(h + s_ref[...], 0.0).astype(o_ref.dtype)


def _choose_spatial_tile(hw, cin, cout, in_bytes, out_bytes, budget):
    """Largest spatial (lane) tile fitting a conservative per-step VMEM budget.

    Prefers the whole image, then a multiple of 128 that divides H*W (no
    padding copy of x needed), then falls back to a padded 128-multiple.
    """
    per_col = 2 * (cin * in_bytes + cout * out_bytes)   # double-buffered in + out
    cap = max(128, (budget // per_col) // 128 * 128)
    if hw <= cap:
        return hw
    for cand in range(cap, 127, -128):
        if hw % cand == 0:
            return cand
    return cap


def init_params(cin, cout, key=jax.random.PRNGKey(1)):
    ks = jax.random.split(key, 6)
    nrm = lambda k, shape, scale=0.1: scale * jax.random.normal(k, shape, jnp.float32)
    return {
        "w": nrm(ks[0], (cout, cin, 1, 1)),        # Conv2d weight (O, I, 1, 1)
        "b": nrm(ks[1], (cout,)),                  # Conv2d bias
        "gamma": 1.0 + nrm(ks[2], (cout,)),        # BN weight
        "beta": nrm(ks[3], (cout,)),               # BN bias
        "rm": nrm(ks[4], (cout,)),                 # BN running_mean
        "rv": jnp.abs(nrm(ks[5], (cout,))) + 0.5,  # BN running_var
    }


def enc_mod(x, p, *, compute_dtype=jnp.bfloat16, vmem_budget_bytes=20 << 20):
    N, Cin, H, W = x.shape
    Cout = p["w"].shape[0]
    assert p["w"].shape[1] == Cin
    HW = H * W

    # Fold inference-mode BatchNorm (eps=1e-3) into the conv weight/bias.
    s = p["gamma"] * jax.lax.rsqrt(p["rv"] + 1e-3)                        # (Cout,)
    shift = (p["b"] - p["rm"]) * s + p["beta"]                            # (Cout,)
    Wt = (p["w"].reshape(Cout, Cin) * s[:, None]).astype(compute_dtype)   # (Cout, Cin)
    shift_col = shift.reshape(Cout, 1).astype(jnp.float32)

    # NCHW kept as-is: (N, Cin, H, W) -> (N, Cin, H*W) is a free reshape.
    xf = x.reshape(N, Cin, HW).astype(compute_dtype)

    in_b = jnp.dtype(compute_dtype).itemsize
    t = _choose_spatial_tile(HW, Cin, Cout, in_b, 4, vmem_budget_bytes)
    # v7x shards "parallel" grid axes over 2 TensorCores: for tiny problems make
    # sure there are >= 2 evenly sized grid steps (only when no padding needed).
    if N * pl.cdiv(HW, t) < 2 and HW % 256 == 0:
        t = min(t, HW // 2)
    n_t = pl.cdiv(HW, t)
    HWp = n_t * t
    if HWp != HW:
        # padded columns see x=0 -> relu(shift); they are sliced off below.
        xf = jnp.pad(xf, ((0, 0), (0, 0), (0, HWp - HW)))

    cost = pl.CostEstimate(
        flops=2 * N * HWp * Cin * Cout,
        transcendentals=0,
        bytes_accessed=(xf.size * in_b + Wt.size * in_b + Cout * 4
                        + N * HWp * Cout * 4),
    )

    act = pl.pallas_call(
        _conv_bn_relu_kernel,
        out_shape=jax.ShapeDtypeStruct((N, Cout, HWp), jnp.float32),
        grid_spec=pltpu.PrefetchScalarGridSpec(
            num_scalar_prefetch=0,
            grid=(N, n_t),
            in_specs=[
                # x tile: Cin on sublanes, spatial on lanes.
                pl.BlockSpec((None, Cin, t), lambda n, i: (n, 0, i)),
                # folded weight / shift: grid-invariant -> stay VMEM-resident.
                pl.BlockSpec((Cout, Cin), lambda n, i: (0, 0)),
                pl.BlockSpec((Cout, 1), lambda n, i: (0, 0)),
            ],
            # lane-dense output block (last dim = t, a multiple of 128 or full H*W).
            out_specs=pl.BlockSpec((None, Cout, t), lambda n, i: (n, 0, i)),
        ),
        compiler_params=pltpu.CompilerParams(
            dimension_semantics=("parallel", "parallel")),
        cost_estimate=cost,
    )(xf, Wt, shift_col)

    act = act[:, :, :HW].reshape(N, Cout, H, W)   # slice/reshape are no-ops when HWp == HW

    # TODO(synk): fusing the 2x2 max-pool + pad-ring into the kernel needs
    # lane-strided extraction of the (Cout, H*W) activation (or an in-register
    # (Cout,H*W)->(Cout,H,W) reshape), a fragile Mosaic lowering path; the small
    # pool + border is left to (jitted, fused) XLA below.
    # padding=1 on the 1x1 conv -> width-1 ring that after folded BN + ReLU is
    # the per-channel constant relu(shift).
    border = jnp.maximum(shift, 0.0).astype(jnp.float32)
    padded = jnp.broadcast_to(border.reshape(1, Cout, 1, 1), (N, Cout, H + 2, W + 2))
    padded = padded.at[:, :, 1:H + 1, 1:W + 1].set(act)

    # MaxPool2d(2): kernel=stride=2, floor mode.
    Ho, Wo = (H + 2) // 2, (W + 2) // 2
    pooled = padded[:, :, :2 * Ho, :2 * Wo].reshape(N, Cout, Ho, 2, Wo, 2).max(axis=(3, 5))
    return pooled                                  # NCHW (N, Cout, Ho, Wo)


def _reference(x, p):
    """Pure-JAX reference: Conv2d(1x1, pad=1) + BN(inference) + ReLU + MaxPool2d(2)."""
    Cout = p["w"].shape[0]
    y = jax.lax.conv_general_dilated(
        x, p["w"], window_strides=(1, 1), padding=((1, 1), (1, 1)),
        dimension_numbers=("NCHW", "OIHW", "NCHW"),
        precision=jax.lax.Precision.HIGHEST)
    y = y + p["b"].reshape(1, Cout, 1, 1)
    s = p["gamma"] * jax.lax.rsqrt(p["rv"] + 1e-3)
    z = (y - p["rm"].reshape(1, Cout, 1, 1)) * s.reshape(1, Cout, 1, 1) \
        + p["beta"].reshape(1, Cout, 1, 1)
    a = jnp.maximum(z, 0.0)
    return jax.lax.reduce_window(
        a, -jnp.inf, jax.lax.max,
        window_dimensions=(1, 1, 2, 2), window_strides=(1, 1, 2, 2), padding="VALID")


if __name__ == "__main__":
    Cin, Cout = 4, 32
    params = init_params(Cin, Cout)
    x = jax.random.normal(jax.random.PRNGKey(0), (2, Cin, 16, 16), dtype=jnp.float32)

    enc_bf16 = jax.jit(lambda xx: enc_mod(xx, params))                            # default fast path
    enc_f32 = jax.jit(lambda xx: enc_mod(xx, params, compute_dtype=jnp.float32))  # exact path

    y = jax.block_until_ready(enc_bf16(x))
    y32 = jax.block_until_ready(enc_f32(x))

    y_ref = _reference(x, params)
    assert y.shape == (2, Cout, 9, 9), y.shape
    err32 = float(jnp.max(jnp.abs(y32 - y_ref)))
    assert jnp.allclose(y32, y_ref, atol=1e-5, rtol=1e-5), err32
    err16 = float(jnp.max(jnp.abs(y - y_ref)))
    assert jnp.allclose(y, y_ref, atol=3e-2, rtol=3e-2), err16
    print("KERNEL_OK")
</pallas_src>

<mosaic_0001>
module attributes {stable_mosaic.version = 11 : i64} {
  func.func @_conv_bn_relu_kernel(%arg0: i32, %arg1: i32, %arg2: memref<1x4x256xbf16, #tpu.memory_space<vmem>>, %arg3: memref<32x4xbf16, #tpu.memory_space<vmem>>, %arg4: memref<32x1xf32, #tpu.memory_space<vmem>>, %arg5: memref<1x32x256xf32, #tpu.memory_space<vmem>>) attributes {dimension_semantics = [#tpu.dimension_semantics<parallel>, #tpu.dimension_semantics<parallel>], iteration_bounds = array<i64: 2, 1>, scalar_prefetch = 0 : i64, scratch_operands = 0 : i64, tpu.core_type = #tpu.core_type<tc>, window_params = [{transform_indices = @transform_0, window_bounds = array<i64: 1, 4, 256>}, {pipeline_mode = #tpu.pipeline_mode<synchronous>, transform_indices = @transform_1, window_bounds = array<i64: 32, 4>}, {pipeline_mode = #tpu.pipeline_mode<synchronous>, transform_indices = @transform_2, window_bounds = array<i64: 32, 1>}, {transform_indices = @transform_3, window_bounds = array<i64: 1, 32, 256>}]} {
    %c0 = arith.constant 0 : index
    %c0_0 = arith.constant 0 : index
    %0 = vector.load %arg3[%c0, %c0_0] : memref<32x4xbf16, #tpu.memory_space<vmem>>, vector<32x4xbf16>
    %c0_1 = arith.constant 0 : index
    %c0_2 = arith.constant 0 : index
    %c0_3 = arith.constant 0 : index
    %1 = vector.load %arg2[%c0_1, %c0_2, %c0_3] : memref<1x4x256xbf16, #tpu.memory_space<vmem>>, vector<1x4x256xbf16>
    %2 = vector.shape_cast %1 : vector<1x4x256xbf16> to vector<4x256xbf16>
    %cst = arith.constant dense<0.000000e+00> : vector<32x256xf32>
    %3 = tpu.matmul %0, %2, %cst {dimension_numbers = #tpu.dot_dimension_numbers<[1], [0], [0], [1], [0, 0, 1, 1], [], []>} : vector<32x4xbf16>, vector<4x256xbf16>, vector<32x256xf32> -> vector<32x256xf32>
    %c0_4 = arith.constant 0 : index
    %c0_5 = arith.constant 0 : index
    %4 = vector.load %arg4[%c0_4, %c0_5] : memref<32x1xf32, #tpu.memory_space<vmem>>, vector<32x1xf32>
    %5 = vector.broadcast %4 : vector<32x1xf32> to vector<32x256xf32>
    %6 = arith.addf %3, %5 : vector<32x256xf32>
    %cst_6 = arith.constant 0.000000e+00 : f32
    %7 = vector.broadcast %cst_6 : f32 to vector<32x256xf32>
    %8 = arith.maximumf %6, %7 : vector<32x256xf32>
    %c0_7 = arith.constant 0 : index
    %c0_8 = arith.constant 0 : index
    %c0_9 = arith.constant 0 : index
    %9 = vector.load %arg5[%c0_7, %c0_8, %c0_9] : memref<1x32x256xf32, #tpu.memory_space<vmem>>, vector<1x32x256xf32>
    %10 = vector.shape_cast %9 : vector<1x32x256xf32> to vector<32x256xf32>
    %11 = vector.shape_cast %8 : vector<32x256xf32> to vector<1x32x256xf32>
    tpu.vector_store %arg5[%c0_7, %c0_8, %c0_9], %11 {strides = array<i32>} : memref<1x32x256xf32, #tpu.memory_space<vmem>>, vector<1x32x256xf32>,
    return
  }
  func.func @transform_0(%arg0: i32, %arg1: i32) -> (i32, i32, i32) {
    %c0_i32 = arith.constant 0 : i32
    %c0_i32_0 = arith.constant 0 : i32
    return %arg0, %c0_i32, %arg1 : i32, i32, i32
  }
  func.func @transform_1(%arg0: i32, %arg1: i32) -> (i32, i32) {
    %c0_i32 = arith.constant 0 : i32
    %c0_i32_0 = arith.constant 0 : i32
    %c0_i32_1 = arith.constant 0 : i32
    return %c0_i32, %c0_i32_0 : i32, i32
  }
  func.func @transform_2(%arg0: i32, %arg1: i32) -> (i32, i32) {
    %c0_i32 = arith.constant 0 : i32
    %c0_i32_0 = arith.constant 0 : i32
    %c0_i32_1 = arith.constant 0 : i32
    return %c0_i32, %c0_i32_0 : i32, i32
  }
  func.func @transform_3(%arg0: i32, %arg1: i32) -> (i32, i32, i32) {
    %c0_i32 = arith.constant 0 : i32
    %c0_i32_0 = arith.constant 0 : i32
    return %arg0, %c0_i32, %arg1 : i32, i32, i32
  }
}

</mosaic_0001>

<bundles_post_ra>
// kernel: _lambda_.1
= control target key start
LH: loop header
LB: loop body
LE: loop exit
PB: predicated region body
PF: predicated region fallthrough
CT: control target
= control target key end

     0   :  { %s508_s12 = smov 0   ;;  %s510_s13 = smov 0   ;;  %s573_s0 = inlined_call_operand.vmem [shape: bf16[2,4,256], index: 0, kind: input, shape index: {}]   ;;  %s574_s1 = inlined_call_operand.vmem [shape: bf16[32,4], index: 1, kind: input, shape index: {}]   ;;  %s575_s2 = inlined_call_operand.vmem [shape: f32[32,1], index: 2, kind: input, shape index: {}]   ;;  %s576_s3 = inlined_call_operand.vmem [shape: f32[2,32,256], index: 3, kind: output, shape index: {}]  }
   0x1   :  { %s512_s14 = smov 0  }
   0x2 LB: > { %s25_s15 = sadd.s32 1, %s481_s13  ;;  %p411_p0 = scmp.ge.s32.totalorder %s485_s14, 1  ;;  %s485_s14 = sphi %s512_s14, %s13_s14   ;;  %s481_s13 = sphi %s510_s13, %s578_s13   ;;  %s477_s12 = sphi %s508_s12, %s577_s12  }
   0x3   : > { %p27_p1 = scmp.ge.s32.totalorder %s25_s15, 2  ;;  %p158_p2 = scmp.lt.s32.totalorder %s485_s14, 3 }
   0x5   : > { %s580_s15 = smov (%p27_p1, %s25_s15), 0  ;;  %p159_p3 = pnand %p411_p0, %p158_p2 }
   0x6   : > { %p191_p4 = scmp.lt.s32.totalorder (!%p159_p3), %s477_s12, 1 }
   0x7   : > { %162 = sbr.rel (%p159_p3) target bundleno = 174 (0xae), region = 32 }
   0xc   : > { %v487_v0 = vmov 0   ;;  %v218_v1 = vld [vmem:[%s575_s2 + $0x10] sm:$0xff]  ;;  %v216_v2 = vld [vmem:[%s575_s2] sm:$0xff]  ;;  %s582_s12 = smov (!%p191_p4, %s477_s12), 1  ;;  %v219_v4 = vld [vmem:[%s575_s2 + $0x18] sm:$0xff]  ;;  %vm261_vm0 = vcmask 1041408  }
   0xd   : > { %462 = vset.pattern.permute.xlu1 %v487_v0  ;;  %461 = vset.pattern.permute.xlu0 %v487_v0  ;;  %s430_s20 = sshll.u32 %s582_s12, 2  ;;  %v217_v5 = vld [vmem:[%s575_s2 + $0x8] sm:$0xff]  ;;  %v432_v10 = vld [vmem:[%s574_s1] sm:$0xff]  ;;  %vm254_vm1 = vcmask 31744   ;;  %s431_s5 = sshll.u32 %s582_s12, 6 }
   0xe   : > { %232 = vperm.xlu1 %462, %v218_v1   ;;  %222 = vperm.xlu0 %461, %v216_v2   ;;  %s198_s23 = scalar_lea.vmem %s573_s0, %s430_s20  ;;  %v433_v11 = vld [vmem:[%s574_s1 + $0x8] sm:$0xff]  ;;  %s554_s8 = scalar_lea.vmem %s576_s3, %s431_s5 }
   0xf   : > { %v215_v3 = vld [vmem:[%s198_s23] sm:$0xf] }
  0x10   : > { %251 = vst [vmem:[#allocation1] ss:$4 sm:$0xff] %v215_v3 }
  0x16   : > { %237 = vperm.xlu1 %462, %v219_v4   ;;  %227 = vperm.xlu0 %461, %v217_v5  }
  0x17   : > { %v252_v6 = vld.sshfl [vmem:[#allocation1] sm:$0xff pattern:$0x73625140]  ;;  %v253_v7 = vld.sshfl [vmem:[#allocation1 + $0x8] sm:$0xff pattern:$0x73625140] }
  0x18   : > { %v262_v8 = vsel %vm261_vm0, %v252_v6, 0  ;;  %v264_v9 = vsel %vm261_vm0, %v253_v7, 0 }
  0x19   : > { %273 = vmatpush.bf16.msra.mxu0 %v262_v8  ;;  %434 = vmatpush.bf16.msra.mxu2 %v262_v8 }
  0x1a   : > { %292 = vmatpush.bf16.msra.mxu1 %v264_v9  ;;  %435 = vmatpush.bf16.msra.mxu3 %v264_v9 }
  0x1c   : > { %424 = vmatmul.msk.bf16.vlgmr.msra.gmra.mxu0 %vm254_vm1, %v432_v10  ;;  %425 = vmatmul.msk.bf16.vlgmr.msra.gmra.mxu2 %vm254_vm1, %v433_v11 }
  0x1d   : > { %426 = vmatmul.msk.bf16.vlgmr.msra.gmra.mxu1 %vm254_vm1, %v432_v10  ;;  %427 = vmatmul.msk.bf16.vlgmr.msra.gmra.mxu3 %vm254_vm1, %v433_v11 }
  0x80   : > { %v223_v12 = vpop.permute.xlu0 %222  ;;  %v233_v18 = vpop.permute.xlu1 %232 }
  0x88   : > { %v228_v23 = vpop.permute.xlu0 %227  ;;  %v238_v33 = vpop.permute.xlu1 %237 }
  0x99   : > { %v275_v13 = vpop.f32.mrf.mxu0 }
  0x9a   : > { %v276_v14 = vadd.f32 %v275_v13, %v223_v12  ;;  %v294_v15 = vpop.f32.mrf.mxu1 }
  0x9b   : > { %v295_v16 = vadd.f32 %v294_v15, %v223_v12 }
  0x9c   : > { %v304_v17 = vmax.f32 %v276_v14, 0.0 }
  0x9d   : > { %v305_v19 = vmax.f32 %v295_v16, 0.0 }
  0x9e   : > { %312 = vst [vmem:[%s554_s8] sm:$0xff] %v304_v17 }
  0x9f   : > { %313 = vst [vmem:[%s554_s8 + $0x8] sm:$0xff] %v305_v19  ;;  %v280_v20 = vpop.f32.mrf.mxu2 }
  0xa0   : > { %v281_v21 = vadd.f32 %v280_v20, %v233_v18  ;;  %v299_v22 = vpop.f32.mrf.mxu3 }
  0xa1   : > { %v300_v24 = vadd.f32 %v299_v22, %v233_v18  ;;  %v277_v25 = vpop.f32.mrf.mxu0 }
  0xa2   : > { %v308_v26 = vmax.f32 %v281_v21, 0.0  ;;  %v278_v27 = vadd.f32 %v277_v25, %v228_v23  ;;  %v296_v28 = vpop.f32.mrf.mxu1 }
  0xa3   : > { %v309_v29 = vmax.f32 %v300_v24, 0.0  ;;  %v297_v30 = vadd.f32 %v296_v28, %v228_v23 }
  0xa4   : > { %316 = vst [vmem:[%s554_s8 + $0x20] sm:$0xff] %v308_v26  ;;  %v306_v31 = vmax.f32 %v278_v27, 0.0 }
  0xa5   : > { %317 = vst [vmem:[%s554_s8 + $0x28] sm:$0xff] %v309_v29  ;;  %v307_v32 = vmax.f32 %v297_v30, 0.0 }
  0xa6   : > { %314 = vst [vmem:[%s554_s8 + $0x10] sm:$0xff] %v306_v31 }
  0xa7   : > { %315 = vst [vmem:[%s554_s8 + $0x18] sm:$0xff] %v307_v32  ;;  %v282_v34 = vpop.f32.mrf.mxu2 }
  0xa8   : > { %v283_v35 = vadd.f32 %v282_v34, %v238_v33  ;;  %v301_v36 = vpop.f32.mrf.mxu3 }
  0xa9   : > { %v302_v37 = vadd.f32 %v301_v36, %v238_v33 }
  0xaa   : > { %v310_v38 = vmax.f32 %v283_v35, 0.0 }
  0xab   : > { %v311_v39 = vmax.f32 %v302_v37, 0.0 }
  0xac   : > { %318 = vst [vmem:[%s554_s8 + $0x30] sm:$0xff] %v310_v38 }
  0xad   : > { %319 = vst [vmem:[%s554_s8 + $0x38] sm:$0xff] %v311_v39 }
  0xae PF: > { %s13_s14 = sadd.s32 1, %s485_s14   ;;  %s577_s12 = smov %s481_s13 }
  0xaf   : > { %p10_p5 = scmp.ge.s32.totalorder %s13_s14, 4   ;;  %s578_s13 = smov %s580_s15 }
  0xb1   :  { %12 = sbr.rel (!%p10_p5) target bundleno = 2 (0x2), region = 62 }

</bundles_post_ra>
